<compile_context>
chip_gen: v7x
topology: tpu7x:2x2x1
jax: 0.10.0
libtpu: 0.0.40
codegen_flags: <defaults>
</compile_context>

<pallas_src>
import jax
import jax.numpy as jnp
from jax import lax
from jax.experimental import pallas as pl
from jax.experimental.pallas import tpu as pltpu


def _ffm_kernel(src_ref, tgt_ref, edge_ref, node_ref, out_ref):
    """One grid step processes one tile of edges for one D-chunk.

    src_ref  : (1, tE)  int32  source node id per edge (padded edges carry id == N)
    tgt_ref  : (1, tE)  int32  target node id per edge
    edge_ref : (tE, tD) f32    edge embeddings for this tile / D-chunk
    node_ref : (N, tD)  f32    node embeddings for this D-chunk (resident across edge axis)
    out_ref  : (N, tD)  f32    resident output block; doubles as the f32 accumulator
    """
    e_step = pl.program_id(1)

    @pl.when(e_step == 0)
    def _():
        out_ref[...] = jnp.zeros_like(out_ref)

    N = node_ref.shape[0]
    tE = edge_ref.shape[0]

    src_ids = src_ref[...]            # (1, tE) int32, lane-major
    tgt_ids = tgt_ref[...]            # (1, tE) int32, lane-major

    # Single shared iota; both one-hots in (N, tE) orientation, bf16 (exact values 0/1).
    node_iota = lax.broadcasted_iota(jnp.int32, (N, tE), 0)
    tgt_oh = (node_iota == tgt_ids).astype(jnp.bfloat16)     # (N, tE)
    src_oh = (node_iota == src_ids).astype(jnp.bfloat16)     # (N, tE)

    node_bf = node_ref[...].astype(jnp.bfloat16)             # (N, tD)

    # gathered[e, d] = node[tgt[e], d]  -- lhs-transposed MXU matmul, f32 accumulate.
    gathered = lax.dot_general(
        tgt_oh, node_bf,
        dimension_numbers=(((0,), (0,)), ((), ())),
        preferred_element_type=jnp.float32)                  # (tE, tD) f32

    # Elementwise weighting stays in f32 (v5e has no bf16 VPU path).
    weighted = gathered * edge_ref[...]                      # (tE, tD) f32

    # Scatter-add onto source nodes (duplicate sources accumulate) via the MXU,
    # straight into the resident output block.
    out_ref[...] += jnp.dot(src_oh, weighted.astype(jnp.bfloat16),
                            preferred_element_type=jnp.float32)  # (N, tD)

    @pl.when(e_step == pl.num_programs(1) - 1)
    def _():
        # out[n] = node[n] + node[n] * acc[n] = node[n] * (1 + acc[n])
        out_ref[...] = node_ref[...] * (1.0 + out_ref[...])


def ffm_forward(node_embed, edge_index, edge_embed, *,
                edge_tile=2048, vmem_budget_bytes=20 * 1024 * 1024):
    """node_embed: (N, D) f32, edge_index: (2, E) int32, edge_embed: (E, D) f32."""
    node_embed = node_embed.astype(jnp.float32)
    edge_embed = edge_embed.astype(jnp.float32)
    edge_index = edge_index.astype(jnp.int32)

    N, D = node_embed.shape
    E = edge_index.shape[1]

    # Leading "parallel" D-split so both v7x TensorCores run; only legal when every
    # chunk keeps a lane dimension that is a multiple of 128.
    n_d = 2 if D % 256 == 0 else 1
    tD = D // n_d

    assert edge_tile % 128 == 0 and edge_tile >= 128, "edge_tile must be a multiple of 128"

    def vmem_est(te):
        resident = 2 * N * tD * 4                    # node + out blocks (f32)
        edge_buf = 2 * (te * tD * 4 + 2 * te * 4)    # double-buffered edge tile + id rows
        temps = 2 * N * te * 2 + N * te * 4 + te * tD * 4  # bf16 one-hots + iota + weighted
        return resident + edge_buf + temps

    # Shrink the edge tile (to a multiple of 128) until the footprint fits the budget.
    tE = edge_tile
    while tE > 128 and vmem_est(tE) > vmem_budget_bytes:
        tE = max(128, (tE // 2) // 128 * 128)

    if E <= tE:
        # Single edge tile: just round E up to a sublane multiple (block == full array).
        tE = max(8, -(-E // 8) * 8)
    E_pad = -(-E // tE) * tE
    pad = E_pad - E

    # Padded edges: src id == N (never matches a real node -> zero one-hot column),
    # tgt id 0 and zero edge embedding (harmless). Both id vectors are lane-major rows.
    src_row = jnp.concatenate(
        [edge_index[0], jnp.full((pad,), N, dtype=jnp.int32)]).reshape(1, E_pad)
    tgt_row = jnp.concatenate(
        [edge_index[1], jnp.zeros((pad,), dtype=jnp.int32)]).reshape(1, E_pad)
    edge_p = jnp.concatenate(
        [edge_embed, jnp.zeros((pad, D), dtype=jnp.float32)], axis=0)

    grid = (n_d, E_pad // tE)

    out = pl.pallas_call(
        _ffm_kernel,
        out_shape=jax.ShapeDtypeStruct((N, D), jnp.float32),
        grid_spec=pltpu.PrefetchScalarGridSpec(
            num_scalar_prefetch=0,
            grid=grid,
            in_specs=[
                pl.BlockSpec((1, tE), lambda d, e: (0, e)),    # src ids
                pl.BlockSpec((1, tE), lambda d, e: (0, e)),    # tgt ids
                pl.BlockSpec((tE, tD), lambda d, e: (e, d)),   # edge embeddings
                pl.BlockSpec((N, tD), lambda d, e: (0, d)),    # node embeddings (resident)
            ],
            out_specs=pl.BlockSpec((N, tD), lambda d, e: (0, d)),
        ),
        compiler_params=pltpu.CompilerParams(
            dimension_semantics=("parallel", "arbitrary"),
            vmem_limit_bytes=64 * 1024 * 1024,
        ),
    )(src_row, tgt_row, edge_p, node_embed)
    return out


if __name__ == "__main__":
    embedding_dim = 32
    num_nodes = 10
    num_edges = 10

    key = jax.random.PRNGKey(0)
    k_node, k_edge = jax.random.split(key)
    node_embed = jax.random.normal(k_node, (num_nodes, embedding_dim), dtype=jnp.float32)
    edge_embed = jax.random.normal(k_edge, (num_edges, embedding_dim), dtype=jnp.float32)
    edge_index = jnp.array(
        [[0, 1, 2, 3, 4, 5, 6, 7, 8, 9],
         [1, 0, 2, 1, 3, 2, 4, 3, 5, 4]], dtype=jnp.int32)

    out = ffm_forward(node_embed, edge_index, edge_embed)
    out = jax.block_until_ready(out)

    # Pure-JAX f32 reference (scatter-add with repeated source indices accumulating).
    src, tgt = edge_index[0], edge_index[1]
    ref = node_embed.at[src].add(node_embed[src] * node_embed[tgt] * edge_embed)

    assert out.shape == (num_nodes, embedding_dim)
    # Tolerance loosened for the bf16 MXU inputs (~1e-3 relative drift).
    assert jnp.allclose(out, ref, atol=5e-2, rtol=5e-2), "mismatch vs reference"
    print("KERNEL_OK")
</pallas_src>

<mosaic_0001>
module attributes {stable_mosaic.version = 11 : i64} {
  func.func @_ffm_kernel(%arg0: i32, %arg1: i32, %arg2: memref<1x16xi32, #tpu.memory_space<vmem>>, %arg3: memref<1x16xi32, #tpu.memory_space<vmem>>, %arg4: memref<16x32xf32, #tpu.memory_space<vmem>>, %arg5: memref<10x32xf32, #tpu.memory_space<vmem>>, %arg6: memref<10x32xf32, #tpu.memory_space<vmem>>) attributes {dimension_semantics = [#tpu.dimension_semantics<parallel>, #tpu.dimension_semantics<arbitrary>], iteration_bounds = array<i64: 1, 1>, scalar_prefetch = 0 : i64, scratch_operands = 0 : i64, tpu.core_type = #tpu.core_type<tc>, window_params = [{transform_indices = @transform_0, window_bounds = array<i64: 1, 16>}, {transform_indices = @transform_1, window_bounds = array<i64: 1, 16>}, {transform_indices = @transform_2, window_bounds = array<i64: 16, 32>}, {transform_indices = @transform_3, window_bounds = array<i64: 10, 32>}, {transform_indices = @transform_4, window_bounds = array<i64: 10, 32>}]} {
    %c0_i32 = arith.constant 0 : i32
    %0 = arith.cmpi eq, %arg1, %c0_i32 : i32
    %1 = arith.extui %0 : i1 to i32
    %c0_i32_0 = arith.constant 0 : i32
    %2 = arith.cmpi ne, %1, %c0_i32_0 : i32
    scf.if %2 {
      %cst_15 = arith.constant 0.000000e+00 : f32
      %29 = vector.broadcast %cst_15 : f32 to vector<10x32xf32>
      %c0_16 = arith.constant 0 : index
      %c0_17 = arith.constant 0 : index
      %30 = vector.load %arg6[%c0_16, %c0_17] : memref<10x32xf32, #tpu.memory_space<vmem>>, vector<10x32xf32>
      tpu.vector_store %arg6[%c0_16, %c0_17], %29 {strides = array<i32>} : memref<10x32xf32, #tpu.memory_space<vmem>>, vector<10x32xf32>,
    } else {
    }
    %c0 = arith.constant 0 : index
    %c0_1 = arith.constant 0 : index
    %3 = vector.load %arg2[%c0, %c0_1] : memref<1x16xi32, #tpu.memory_space<vmem>>, vector<1x16xi32>
    %c0_2 = arith.constant 0 : index
    %c0_3 = arith.constant 0 : index
    %4 = vector.load %arg3[%c0_2, %c0_3] : memref<1x16xi32, #tpu.memory_space<vmem>>, vector<1x16xi32>
    %5 = tpu.iota {dimensions = array<i32: 0>} : vector<10x16xi32>
    %6 = vector.broadcast %4 : vector<1x16xi32> to vector<10x16xi32>
    %7 = arith.cmpi eq, %5, %6 : vector<10x16xi32>
    %8 = arith.extui %7 : vector<10x16xi1> to vector<10x16xi32>
    %9 = arith.sitofp %8 : vector<10x16xi32> to vector<10x16xf32>
    %10 = arith.truncf %9 : vector<10x16xf32> to vector<10x16xbf16>
    %11 = vector.broadcast %3 : vector<1x16xi32> to vector<10x16xi32>
    %12 = arith.cmpi eq, %5, %11 : vector<10x16xi32>
    %13 = arith.extui %12 : vector<10x16xi1> to vector<10x16xi32>
    %14 = arith.sitofp %13 : vector<10x16xi32> to vector<10x16xf32>
    %15 = arith.truncf %14 : vector<10x16xf32> to vector<10x16xbf16>
    %c0_4 = arith.constant 0 : index
    %c0_5 = arith.constant 0 : index
    %16 = vector.load %arg5[%c0_4, %c0_5] : memref<10x32xf32, #tpu.memory_space<vmem>>, vector<10x32xf32>
    %17 = arith.truncf %16 : vector<10x32xf32> to vector<10x32xbf16>
    %cst = arith.constant dense<0.000000e+00> : vector<16x32xf32>
    %18 = tpu.matmul %10, %17, %cst {dimension_numbers = #tpu.dot_dimension_numbers<[0], [0], [1], [1], [0, 1, 1, 1], [], []>} : vector<10x16xbf16>, vector<10x32xbf16>, vector<16x32xf32> -> vector<16x32xf32>
    %c0_6 = arith.constant 0 : index
    %c0_7 = arith.constant 0 : index
    %19 = vector.load %arg4[%c0_6, %c0_7] : memref<16x32xf32, #tpu.memory_space<vmem>>, vector<16x32xf32>
    %20 = arith.mulf %18, %19 : vector<16x32xf32>
    %c0_8 = arith.constant 0 : index
    %c0_9 = arith.constant 0 : index
    %21 = vector.load %arg6[%c0_8, %c0_9] : memref<10x32xf32, #tpu.memory_space<vmem>>, vector<10x32xf32>
    %22 = arith.truncf %20 : vector<16x32xf32> to vector<16x32xbf16>
    %cst_10 = arith.constant dense<0.000000e+00> : vector<10x32xf32>
    %23 = tpu.matmul %15, %22, %cst_10 {dimension_numbers = #tpu.dot_dimension_numbers<[1], [0], [0], [1], [0, 0, 1, 1], [], []>} : vector<10x16xbf16>, vector<16x32xbf16>, vector<10x32xf32> -> vector<10x32xf32>
    %24 = arith.addf %21, %23 : vector<10x32xf32>
    %c0_11 = arith.constant 0 : index
    %c0_12 = arith.constant 0 : index
    %25 = vector.load %arg6[%c0_11, %c0_12] : memref<10x32xf32, #tpu.memory_space<vmem>>, vector<10x32xf32>
    tpu.vector_store %arg6[%c0_11, %c0_12], %24 {strides = array<i32>} : memref<10x32xf32, #tpu.memory_space<vmem>>, vector<10x32xf32>,
    %c0_i32_13 = arith.constant 0 : i32
    %26 = arith.cmpi eq, %arg1, %c0_i32_13 : i32
    %27 = arith.extui %26 : i1 to i32
    %c0_i32_14 = arith.constant 0 : i32
    %28 = arith.cmpi ne, %27, %c0_i32_14 : i32
    scf.if %28 {
      %c0_15 = arith.constant 0 : index
      %c0_16 = arith.constant 0 : index
      %29 = vector.load %arg5[%c0_15, %c0_16] : memref<10x32xf32, #tpu.memory_space<vmem>>, vector<10x32xf32>
      %c0_17 = arith.constant 0 : index
      %c0_18 = arith.constant 0 : index
      %30 = vector.load %arg6[%c0_17, %c0_18] : memref<10x32xf32, #tpu.memory_space<vmem>>, vector<10x32xf32>
      %cst_19 = arith.constant 1.000000e+00 : f32
      %31 = vector.broadcast %cst_19 : f32 to vector<10x32xf32>
      %32 = arith.addf %31, %30 : vector<10x32xf32>
      %33 = arith.mulf %29, %32 : vector<10x32xf32>
      %c0_20 = arith.constant 0 : index
      %c0_21 = arith.constant 0 : index
      %34 = vector.load %arg6[%c0_20, %c0_21] : memref<10x32xf32, #tpu.memory_space<vmem>>, vector<10x32xf32>
      tpu.vector_store %arg6[%c0_20, %c0_21], %33 {strides = array<i32>} : memref<10x32xf32, #tpu.memory_space<vmem>>, vector<10x32xf32>,
    } else {
    }
    return
  }
  func.func @transform_0(%arg0: i32, %arg1: i32) -> (i32, i32) {
    %c0_i32 = arith.constant 0 : i32
    %c0_i32_0 = arith.constant 0 : i32
    return %c0_i32, %arg1 : i32, i32
  }
  func.func @transform_1(%arg0: i32, %arg1: i32) -> (i32, i32) {
    %c0_i32 = arith.constant 0 : i32
    %c0_i32_0 = arith.constant 0 : i32
    return %c0_i32, %arg1 : i32, i32
  }
  func.func @transform_2(%arg0: i32, %arg1: i32) -> (i32, i32) {
    %c0_i32 = arith.constant 0 : i32
    return %arg1, %arg0 : i32, i32
  }
  func.func @transform_3(%arg0: i32, %arg1: i32) -> (i32, i32) {
    %c0_i32 = arith.constant 0 : i32
    %c0_i32_0 = arith.constant 0 : i32
    return %c0_i32, %arg0 : i32, i32
  }
  func.func @transform_4(%arg0: i32, %arg1: i32) -> (i32, i32) {
    %c0_i32 = arith.constant 0 : i32
    %c0_i32_0 = arith.constant 0 : i32
    return %c0_i32, %arg0 : i32, i32
  }
}

</mosaic_0001>

<bundles_post_ra>
// kernel: tpu_custom_call.1
= control target key start
LH: loop header
LB: loop body
LE: loop exit
PB: predicated region body
PF: predicated region fallthrough
CT: control target
= control target key end

     0   :  { %9 = vsyncpa [#allocation3], 0  ;;  %s524_s0 = inlined_call_operand.hbm [shape: s32[1,16], index: 0, kind: input, shape index: {}]   ;;  %s525_s1 = inlined_call_operand.hbm [shape: s32[1,16], index: 1, kind: input, shape index: {}]   ;;  %s526_s2 = inlined_call_operand.hbm [shape: f32[16,32], index: 2, kind: input, shape index: {}]   ;;  %s527_s3 = inlined_call_operand.hbm [shape: f32[10,32], index: 3, kind: input, shape index: {}]   ;;  %s528_s4 = inlined_call_operand.hbm [shape: f32[10,32], index: 4, kind: output, shape index: {}]  }
   0x1   :  { %10 = vsyncpa [#allocation6], 0 }
   0x2   :  { %11 = vsyncpa [#allocation9], 0 }
   0x3   :  { %12 = vsyncpa [#allocation4], 0  ;;  %s415_s15 = smov [#allocation5]   ;;  %s416_s17 = smov [#allocation2]  }
   0x4   :  { %s29_s16 = sshll.u32 %s415_s15, 4  ;;  %s19_s18 = sshll.u32 %s416_s17, 4  ;;  %s30_s16 = int_to_ptr.vmem [resolvable:$true] %s29_s16  ;;  %s20_s18 = int_to_ptr.vmem [resolvable:$true] %s19_s18 }
   0x5   :  { %s297_s21 = scalar_lea.hbm %s525_s1, 16 }
   0x6   :  { %p298_p0 = scmp.ne.s32.totalorder %s525_s1, %s297_s21  ;;  %p301_p1 = scmp.lt.u32.totalorder %s297_s21, %s525_s1 }
   0x8   :  { %p303_p2 = pnand %p301_p1, %p298_p0 }
   0xa   :  { %306 = shalt.err (!%p303_p2)
}
   0xb   :  { %s307_s26 = scalar_lea.vmem %s30_s16, 16  ;;  %s311_s27 = scalar_lea.vmem %s30_s16, 32 }
   0xc   :  { %p308_p3 = scmp.ne.s32.totalorder %s30_s16, %s307_s26  ;;  %p312_p4 = scmp.lt.s32.totalorder %s30_s16, %s30_s16 }
   0xd   :  { %p313_p5 = scmp.lt.s32.totalorder %s311_s27, %s307_s26 }
   0xf   :  { %p314_p6 = por %p313_p5, %p312_p4 }
  0x11   :  { %p315_p7 = pnand %p314_p6, %p308_p3 }
  0x13   :  { %318 = shalt.err (!%p315_p7)
}
  0x14   :  { %32 = dma.hbm_to_vmem [thread:$0]  %s525_s1, 16, %s30_s16, [#allocation6]  }
  0x15   :  { %s319_s6 = scalar_lea.hbm %s524_s0, 16 }
  0x16   :  { %p320_p8 = scmp.ne.s32.totalorder %s524_s0, %s319_s6  ;;  %p323_p9 = scmp.lt.u32.totalorder %s319_s6, %s524_s0 }
  0x18   :  { %p325_p10 = pnand %p323_p9, %p320_p8 }
  0x1a   :  { %328 = shalt.err (!%p325_p10)
}
  0x1b   :  { %s329_s11 = scalar_lea.vmem %s20_s18, 16  ;;  %s333_s12 = scalar_lea.vmem %s20_s18, 32 }
  0x1c   :  { %p330_p11 = scmp.ne.s32.totalorder %s20_s18, %s329_s11  ;;  %p334_p12 = scmp.lt.s32.totalorder %s20_s18, %s20_s18 }
  0x1d   :  { %p335_p13 = scmp.lt.s32.totalorder %s333_s12, %s329_s11 }
  0x1f   :  { %p336_p0 = por %p335_p13, %p334_p12 }
  0x21   :  { %p337_p1 = pnand %p336_p0, %p330_p11 }
  0x23   :  { %340 = shalt.err (!%p337_p1)
}
  0x24   :  { %22 = dma.hbm_to_vmem [thread:$0]  %s524_s0, 16, %s20_s18, [#allocation3]  }
  0x25   :  { %s417_s14 = smov [#allocation7]   ;;  %s341_s19 = scalar_lea.hbm %s526_s2, 256 }
  0x26   :  { %s38_s15 = sshll.u32 %s417_s14, 4  ;;  %p342_p2 = scmp.ne.s32.totalorder %s526_s2, %s341_s19  ;;  %s39_s15 = int_to_ptr.vmem [resolvable:$true] %s38_s15 }
  0x27   :  { %p345_p3 = scmp.lt.u32.totalorder %s341_s19, %s526_s2 }
  0x29   :  { %p347_p4 = pnand %p345_p3, %p342_p2 }
  0x2b   :  { %350 = shalt.err (!%p347_p4)
}
  0x2c   :  { %s351_s24 = scalar_lea.vmem %s39_s15, 256  ;;  %p356_p6 = scmp.lt.s32.totalorder %s39_s15, %s39_s15 }
  0x2d   :  { %p352_p5 = scmp.ne.s32.totalorder %s39_s15, %s351_s24  ;;  %p357_p7 = scmp.lt.s32.totalorder %s351_s24, %s351_s24 }
  0x2f   :  { %p358_p8 = por %p357_p7, %p356_p6 }
  0x31   :  { %p359_p9 = pnand %p358_p8, %p352_p5 }
  0x33   :  { %362 = shalt.err (!%p359_p9)
}
  0x34   :  { %s418_s0 = smov 128   ;;  %s419_s18 = smov 8  }
  0x35   :  { %44 = dma.hbm_to_vmem [thread:$0]  %s526_s2, 256, %s39_s15, [#allocation6], %s418_s0, %s418_s0, %s419_s18  }
  0x36   :  { %s420_s27 = smov [#allocation8]   ;;  %s363_s5 = scalar_lea.hbm %s527_s3, 256 }
  0x37   :  { %s50_s28 = sshll.u32 %s420_s27, 4  ;;  %p364_p10 = scmp.ne.s32.totalorder %s527_s3, %s363_s5  ;;  %s51_s28 = int_to_ptr.vmem [resolvable:$true] %s50_s28 }
  0x38   :  { %p367_p11 = scmp.lt.u32.totalorder %s363_s5, %s527_s3 }
  0x3a   :  { %p369_p12 = pnand %p367_p11, %p364_p10 }
  0x3c   :  { %372 = shalt.err (!%p369_p12)
}
  0x3d   :  { %s373_s10 = scalar_lea.vmem %s51_s28, 256  ;;  %p378_p0 = scmp.lt.s32.totalorder %s51_s28, %s51_s28 }
  0x3e   :  { %p374_p13 = scmp.ne.s32.totalorder %s51_s28, %s373_s10  ;;  %p379_p1 = scmp.lt.s32.totalorder %s373_s10, %s373_s10 }
  0x40   :  { %p380_p2 = por %p379_p1, %p378_p0 }
  0x42   :  { %p381_p3 = pnand %p380_p2, %p374_p13 }
  0x44   :  { %384 = shalt.err (!%p381_p3)
}
  0x45   :  { %56 = dma.hbm_to_vmem [thread:$0]  %s527_s3, 256, %s51_s28, [#allocation9], %s418_s0, %s418_s0, %s419_s18  }
  0x46   :  { %407 = dma.done.wait [#allocation3], 16  }
  0x47   :  { %408 = vsyncadd [#allocation3], 4294967280 }
  0x48   :  { %409 = dma.done.wait [#allocation6], 272  }
  0x49   :  { %410 = vsyncadd [#allocation6], 4294967024 }
  0x4a   :  { %411 = dma.done.wait [#allocation9], 256  }
  0x4b   :  { %412 = vsyncadd [#allocation9], 4294967040  ;;  %v80_v0 = vlaneseq  ;;  %v421_v1 = vmov 0.0   ;;  %vm422_vm0 = vmmov 0   ;;  %v263_v4 = vld [vmem:[#allocation5] ss:$0 sm:$0xff] }
  0x4c   :  { %275 = vmatprep.subr.bf16.mxu0 %v421_v1  ;;  %281 = vmatprep.subr.bf16.mxu1 %v421_v1  ;;  %v105_v5 = vld [vmem:[#allocation8] sm:$0xff]  ;;  %v106_v6 = vld [vmem:[#allocation8 + $0x8] sm:$0x3]  ;;  %vm128_vm3 = vcmask 1044480   ;;  %vm124_vm4 = vcmask 80896   ;;  %vm74_vm7 = vcmask 261120  }
  0x4d   :  { %v81_v2 = vshrl.u32 %v80_v0, 7  ;;  %277 = vmatprep.mubr.msk.bf16.mxu0 %vm422_vm0, %v421_v1  ;;  %283 = vmatprep.mubr.msk.bf16.mxu1 %vm422_vm0, %v421_v1  ;;  %v107_v9 = vpack.c.bf16 %v106_v6, %v105_v5  ;;  %v266_v13 = vld [vmem:[#allocation2] ss:$0 sm:$0xff]  ;;  %75 = vst.msk [vmem:[#allocation10] sm:$0xff] %vm74_vm7, %v421_v1  ;;  %v173_v18 = vld [vmem:[#allocation7] sm:$0xff]  ;;  %v174_v19 = vld [vmem:[#allocation7 + $0x8] sm:$0xff] }
  0x4e   :  { %vm180_vm8 = vcmask 130048   ;;  %vm76_vm9 = vcmask 254976   ;;  %v235_v36 = vld [vmem:[#allocation8 + $0x8] sm:$0x3]  ;;  %s423_s3 = smov [#allocation10]  }
  0x4f   :  { %v82_v3 = vadd.s32 8, %v81_v2  ;;  %vm87_vm1 = vcmp.eq.s32.totalorder %v81_v2, %v263_v4  ;;  %v130_v11 = vsel %vm128_vm3, %v107_v9, 0  ;;  %vm98_vm6 = vcmp.eq.s32.totalorder %v81_v2, %v266_v13  ;;  %77 = vst.msk [vmem:[#allocation10 + $0x8] sm:$0x3] %vm76_vm9, %v421_v1  ;;  %s249_s12 = sshll.u32 %s423_s3, 4  ;;  %s250_s12 = int_to_ptr.vmem [resolvable:$true] %s249_s12 }
  0x50   :  { %v264_v7 = vsel %vm87_vm1, 1.0, %v421_v1  ;;  %276 = vmatpush3.bf16.msra.mxu0 %v130_v11  ;;  %v267_v15 = vsel %vm98_vm6, 1.0, %v421_v1  ;;  %s385_s1 = scalar_lea.vmem %s250_s12, 256  ;;  %p390_p5 = scmp.lt.s32.totalorder %s250_s12, %s250_s12 }
  0x51   :  { %vm88_vm2 = vcmp.eq.s32.totalorder %v82_v3, %v263_v4  ;;  %vm99_vm5 = vcmp.eq.s32.totalorder %v82_v3, %v266_v13  ;;  %p386_p4 = scmp.ne.s32.totalorder %s250_s12, %s385_s1  ;;  %p391_p6 = scmp.lt.s32.totalorder %s385_s1, %s385_s1 }
  0x52   :  { %v265_v8 = vsel %vm88_vm2, 1.0, %v421_v1  ;;  %v268_v14 = vsel %vm99_vm5, 1.0, %v421_v1 }
  0x53   :  { %v93_v10 = vpack.c.bf16 %v265_v8, %v264_v7  ;;  %v104_v16 = vpack.c.bf16 %v268_v14, %v267_v15  ;;  %p392_p7 = por %p391_p6, %p390_p5 }
  0x54   :  { %v177_v26 = vld [vmem:[#allocation10] sm:$0xff] }
  0x55   :  { %108 = vxpose.xlu0.c.b16.start.end [1/1] (short) (narrow) %v93_v10, 16  ;;  %p393_p8 = pnand %p392_p7, %p386_p4 }
  0x56   :  { %v178_v28 = vld [vmem:[#allocation10 + $0x8] sm:$0x3] }
  0xbb   :  { %v116_v12 = vpop.trf.xlu0 }
  0xbc   :  { %278 = vmatmul.mubr.msk.bf16.vlgmr.msra.gmra.mrb[0].mxu0 %vm124_vm4, %v116_v12 }
 0x18f   :  { %v166_v17 = vpop.f32.mrb[0].mxu0 }
 0x190   :  { %v279_v20 = vpop.f32.mrb[1].mxu0  ;;  %v175_v22 = vmul.f32 %v173_v18, %v166_v17 }
 0x191   :  { %v169_v21 = vpop.f32.mrb[2].mxu0 }
 0x192   :  { %v176_v23 = vmul.f32 %v174_v19, %v169_v21  ;;  %v280_v24 = vpop.f32.mrb[3].mxu0 }
 0x194   :  { %v179_v25 = vpack.c.bf16 %v176_v23, %v175_v22 }
 0x196   :  { %282 = vmatpush3.bf16.msra.mxu1 %v179_v25 }
 0x199   :  { %284 = vmatmul.mubr.msk.bf16.vlgmr.msra.gmra.mrb[0].mxu1 %vm180_vm8, %v104_v16 }
 0x26c   :  { %v218_v27 = vpop.f32.mrb[0].mxu1 }
 0x26d   :  { %v225_v29 = vadd.f32 %v218_v27, %v177_v26  ;;  %v285_v30 = vpop.f32.mrb[1].mxu1 }
 0x26e   :  { %v221_v31 = vpop.f32.mrb[2].mxu1 }
 0x26f   :  { %228 = vst.msk [vmem:[#allocation10] sm:$0xff] %vm74_vm7, %v225_v29  ;;  %v226_v32 = vadd.f32 %v221_v31, %v178_v28  ;;  %v286_v33 = vpop.f32.mrb[3].mxu1 }
 0x271   :  { %230 = vst.msk [vmem:[#allocation10 + $0x8] sm:$0x3] %vm76_vm9, %v226_v32 }
 0x276   :  { %v236_v34 = vld [vmem:[#allocation10] sm:$0xff] }
 0x277   :  { %v238_v35 = vadd.f32 1.0, %v236_v34 }
 0x278   :  { %v237_v37 = vld [vmem:[#allocation10 + $0x8] sm:$0x3] }
 0x279   :  { %v239_v38 = vadd.f32 1.0, %v237_v37  ;;  %v240_v39 = vmul.f32 %v238_v35, %v105_v5 }
 0x27b   :  { %v241_v40 = vmul.f32 %v239_v38, %v235_v36  ;;  %242 = vst.msk [vmem:[#allocation10] sm:$0xff] %vm74_vm7, %v240_v39 }
 0x27d   :  { %243 = vst.msk [vmem:[#allocation10 + $0x8] sm:$0x3] %vm76_vm9, %v241_v40 }
 0x27e   :  { %396 = shalt.err (!%p393_p8)
}
 0x27f   :  { %s397_s15 = scalar_lea.hbm %s528_s4, 256 }
 0x280   :  { %p398_p9 = scmp.ne.s32.totalorder %s528_s4, %s397_s15  ;;  %p401_p10 = scmp.lt.u32.totalorder %s397_s15, %s528_s4 }
 0x282   :  { %p403_p11 = pnand %p401_p10, %p398_p9 }
 0x284   :  { %406 = shalt.err (!%p403_p11)
}
 0x285   :  { %255 = dma.vmem_to_hbm [thread:$0]  %s250_s12, 256, %s528_s4, [#allocation4], %s418_s0, %s418_s0, %s419_s18  }
 0x286   :  { %413 = dma.done.wait [#allocation4], 256  }
 0x287   :  { %414 = vsyncadd [#allocation4], 4294967040 }
 0x288   :  { %259 = vsyncpa [#allocation3], 1 }
 0x289   :  { %260 = vsyncpa [#allocation6], 1 }
 0x28a   :  { %261 = vsyncpa [#allocation9], 1 }
 0x28b   :  { %262 = vsyncpa [#allocation4], 1 }

</bundles_post_ra>
